<compile_context>
chip_gen: v7x
topology: tpu7x:2x2x1
jax: 0.10.0
libtpu: 0.0.40
codegen_flags: <defaults>
</compile_context>

<pallas_src>
import math

import jax
import jax.numpy as jnp
from jax.experimental import pallas as pl
from jax.experimental.pallas import tpu as pltpu

# ----------------------------- configuration -------------------------------
B = 2                  # batch
IMG_H = IMG_W = 16     # global_image_size
PATCH = 4              # stand-in ViT patch size -> 4x4 = 16 patches
N_PATCH = (IMG_H // PATCH) * (IMG_W // PATCH)
PATCH_DIM = 3 * PATCH * PATCH
CLIP_DIM = 32          # stand-in CLIP hidden dim (multiple of 4 for sincos)
EMB_DIM = 32           # projection / cross-attention dim (768 in the reference)
LAT_C = 4              # latent channels
LAT_H = LAT_W = 8
HW_LAT = LAT_H * LAT_W
N_TEXT = 4             # incoming encoder_hidden_states tokens
N_POINTS = 8           # point_uv points
ATTN_D = 32            # stand-in UNet attention head dim
N_TOK = N_TEXT + 1 + N_POINTS   # tokens per batch in the concatenated states


# ----------------------------- Pallas kernel --------------------------------

def _animate_flow_fused_kernel(pmean_ref, enc_ref, local_ref, lat_ref, temb_ref,
                               pw_ref, pb_ref, gw_ref, gb_ref, wq_ref, wkvo_ref,
                               o_ref):
    f32 = jnp.float32

    # ---- visual-encoder stand-in (mean-pool already folded through the linear).
    # TODO(synk): frozen pretrained CLIPVisionModel has no in-file definition; it
    # is replaced by a deterministic patch-embed + mean-pool + post-layernorm
    # stand-in (mean-pool folded through the patch-embed linear, exact by linearity).
    pe_mean = jnp.dot(pmean_ref[...], pw_ref[...],
                      preferred_element_type=f32) + pb_ref[...]          # (B, CLIP)

    # pooler_output stand-in: post-layernorm of the pooled embedding (both batches at once).
    mu = jnp.mean(pe_mean, axis=1, keepdims=True)
    var = jnp.mean((pe_mean - mu) ** 2, axis=1, keepdims=True)
    pooler = (pe_mean - mu) * jax.lax.rsqrt(var + 1e-5)                  # (B, CLIP)

    # global projection head ('cls_token' conditioning), both batches in one dot.
    gcond = jnp.dot(pooler, gw_ref[...],
                    preferred_element_type=f32) + gb_ref[...]            # (B, EMB)

    # ---- concatenated encoder_hidden_states = [text | global | local] per batch,
    # stacked across batches so the fused K / (V@Wo) projection is ONE matmul.
    enc = enc_ref[...]                                                   # (B, N_TEXT, EMB)
    local = local_ref[...]                                               # (B*NPT, EMB)
    pieces = []
    for b in range(B):                                                   # static unroll
        pieces.append(enc[b])                                            # (N_TEXT, EMB)
        pieces.append(gcond[b:b + 1, :])                                 # (1, EMB)
        pieces.append(local[b * N_POINTS:(b + 1) * N_POINTS, :])         # (N_POINTS, EMB)
    tokens = jnp.concatenate(pieces, axis=0)                             # (B*N_TOK, EMB)

    # wkvo = [Wk | Wv@Wo] pre-folded in the wrapper -> one (B*N_TOK, D+C) projection.
    kvo = jnp.dot(tokens, wkvo_ref[...], preferred_element_type=f32)     # (B*N_TOK, D+C)

    wqT = wq_ref[...]                                                    # (D, C); scale folded in

    # ---- UNet stand-in: timestep-conditioned cross-attention with residual.
    # TODO(synk): the diffusers UNet(3D)ConditionModel is an external submodule;
    # a single cross-attention block conditioned on the concatenated states stands
    # in (residual adds the raw latent, as in the previous version).
    for b in range(B):                                                   # static unroll
        lat_b = lat_ref[b]                                               # (C, hw)
        xT = lat_b + temb_ref[b]                                         # (C, hw)
        qT = jnp.dot(wqT, xT, preferred_element_type=f32)                # (D, hw)

        kvo_b = kvo[b * N_TOK:(b + 1) * N_TOK, :]                        # (N_TOK, D+C)
        k_b = kvo_b[:, :ATTN_D]                                          # (N_TOK, D)
        ov_b = kvo_b[:, ATTN_D:]                                         # (N_TOK, C) = V@Wo

        sT = jnp.dot(k_b, qT, preferred_element_type=f32)                # (N_TOK, hw) = scores^T
        m = jnp.max(sT, axis=0, keepdims=True)                           # (1, hw)
        e = jnp.exp(sT - m)                                              # (N_TOK, hw)
        l = jnp.sum(e, axis=0, keepdims=True)                            # (1, hw)
        inv_l = pl.reciprocal(l, approx=True)                            # EUP slot (free)

        # out^T = (V Wo)^T P^T ; softmax denominator applied as a per-column scale.
        accT = jax.lax.dot_general(ov_b, e, (((0,), (0,)), ((), ())),
                                   preferred_element_type=f32)           # (C, hw)

        # residual on the raw latent, written channel-major so the wrapper NCHW
        # reshape is free (no transpose).
        o_ref[b] = lat_b + accT * inv_l


# ------------------------------ plain-JAX glue -------------------------------

def posemb_sincos_2d(h, w, dim, temperature=10000, dtype=jnp.float32):
    y, x = jnp.meshgrid(jnp.arange(h), jnp.arange(w), indexing="ij")
    assert dim % 4 == 0, "feature dimension must be multiple of 4 for sincos emb"
    omega = jnp.arange(dim // 4) / max(dim // 4 - 1, 1)   # guard dim==4
    omega = 1.0 / (temperature ** omega)
    y = y.flatten()[:, None] * omega[None, :]
    x = x.flatten()[:, None] * omega[None, :]
    pe = jnp.concatenate([jnp.sin(x), jnp.cos(x), jnp.sin(y), jnp.cos(y)], axis=1)
    return pe.astype(dtype)


def sinusoidal_timestep_embedding(timesteps, dim):
    half = dim // 2
    freqs = jnp.exp(-jnp.log(10000.0) * jnp.arange(half) / max(half, 1))
    args = timesteps.astype(jnp.float32)[:, None] * freqs[None, :]
    return jnp.concatenate([jnp.sin(args), jnp.cos(args)], axis=-1)


def animate_flow_forward(params, noisy_latents, timesteps, encoder_hidden_states,
                         global_image, point_uv, global_condition_type="cls_token"):
    if global_condition_type != "cls_token":
        # TODO(synk): 'patch' / 'all' conditioning change the concatenated token count;
        # only the default 'cls_token' path is fused into the Pallas kernel.
        raise NotImplementedError(global_condition_type)

    Bn, Cimg, H, W = global_image.shape

    # ---- layout plumbing: patchify (stand-in ViT tokenization) + per-batch mean.
    # The mean-pool is folded through the patch-embed linear (exact by linearity),
    # so only a (B, PATCH_DIM) tensor enters the kernel.
    gh, gww = H // PATCH, W // PATCH
    patches = global_image.reshape(Bn, Cimg, gh, PATCH, gww, PATCH)
    patches = jnp.transpose(patches, (0, 2, 4, 1, 3, 5)).reshape(
        Bn, gh * gww, Cimg * PATCH * PATCH)
    pmean = jnp.mean(patches, axis=1)                                     # (B, PATCH_DIM)

    # ---- parameter-only pre-folds (done once in the wrapper, never in the kernel).
    pos_proj = (params["pos_2d"].reshape(H * W, CLIP_DIM) @ params["l_w"]
                + params["l_b"])                                          # (H*W, EMB)
    wov = params["unet_wv"] @ params["unet_wo"]                           # (EMB, C)
    wkvo = jnp.concatenate([params["unet_wk"], wov], axis=1)              # (EMB, D+C)
    wqT_s = (params["unet_wq"] * (1.0 / math.sqrt(ATTN_D))).T             # (D, C)

    # uv -> pos_2d[v, u] gather done in the wrapper (f32, no in-kernel one-hot).
    u = point_uv[:, :, 0].astype(jnp.int32)
    v = point_uv[:, :, 1].astype(jnp.int32)
    flat_idx = (v * W + u).reshape(-1)
    local = jnp.take(pos_proj, flat_idx, axis=0)                          # (B*NPT, EMB)

    # latent tokens channel-major (free reshape of NCHW) + timestep embedding.
    Bl, C, h, w = noisy_latents.shape
    latT = noisy_latents.reshape(Bl, C, h * w)
    tembT = sinusoidal_timestep_embedding(timesteps, C).reshape(Bl, C, 1)

    # TODO(synk): for v7x (2 TensorCores) at production dims, add grid=(B,) with
    # per-batch BlockSpecs + dimension_semantics=("parallel",); at these toy sizes
    # the per-step grid overhead outweighs the second core, so stay grid-less.
    vmem = pl.BlockSpec(memory_space=pltpu.MemorySpace.VMEM)
    out = pl.pallas_call(
        _animate_flow_fused_kernel,
        out_shape=jax.ShapeDtypeStruct((Bl, C, h * w), jnp.float32),
        in_specs=[vmem] * 11,
        out_specs=vmem,
    )(pmean, encoder_hidden_states, local, latT, tembT,
      params["patch_w"], params["patch_b"], params["g_w"], params["g_b"],
      wqT_s, wkvo)
    return out.reshape(Bl, C, h, w)


# -------------------------------- parameters ---------------------------------

def init_params():
    key = jax.random.PRNGKey(0)
    ks = jax.random.split(key, 10)
    s = 0.02
    # NOTE: the reference zero-initializes the projection heads (zero_module);
    # small non-zero deterministic values are used here so the kernel computes
    # non-trivial outputs.
    params = {
        "patch_w": s * jax.random.normal(ks[0], (PATCH_DIM, CLIP_DIM), jnp.float32),
        "patch_b": s * jax.random.normal(ks[1], (1, CLIP_DIM), jnp.float32),
        "g_w": s * jax.random.normal(ks[2], (CLIP_DIM, EMB_DIM), jnp.float32),
        "g_b": s * jax.random.normal(ks[3], (1, EMB_DIM), jnp.float32),
        "l_w": s * jax.random.normal(ks[4], (CLIP_DIM, EMB_DIM), jnp.float32),
        "l_b": s * jax.random.normal(ks[5], (1, EMB_DIM), jnp.float32),
        "unet_wq": s * jax.random.normal(ks[6], (LAT_C, ATTN_D), jnp.float32),
        "unet_wk": s * jax.random.normal(ks[7], (EMB_DIM, ATTN_D), jnp.float32),
        "unet_wv": s * jax.random.normal(ks[8], (EMB_DIM, ATTN_D), jnp.float32),
        "unet_wo": s * jax.random.normal(ks[9], (ATTN_D, LAT_C), jnp.float32),
        "pos_2d": posemb_sincos_2d(IMG_H, IMG_W, CLIP_DIM).reshape(
            IMG_H, IMG_W, CLIP_DIM),
    }
    return params


# ----------------------------------- main -------------------------------------

if __name__ == "__main__":
    params = init_params()
    key = jax.random.PRNGKey(0)
    k1, k2, k3, k4, k5 = jax.random.split(key, 5)

    noisy_latents = jax.random.normal(k1, (B, LAT_C, LAT_H, LAT_W), jnp.float32)
    timesteps = jax.random.randint(k2, (B,), 0, 1000).astype(jnp.int32)
    encoder_hidden_states = jax.random.normal(k3, (B, N_TEXT, EMB_DIM), jnp.float32)
    global_image = jax.random.normal(k4, (B, 3, IMG_H, IMG_W), jnp.float32)
    point_uv = jax.random.randint(k5, (B, N_POINTS, 2), 0, IMG_W).astype(jnp.int32)

    forward = jax.jit(animate_flow_forward)
    out = forward(params, noisy_latents, timesteps, encoder_hidden_states,
                  global_image, point_uv)
    out = jax.block_until_ready(out)
    assert out.shape == noisy_latents.shape and out.dtype == jnp.float32
    print("KERNEL_OK")
</pallas_src>

<mosaic_0001>
module attributes {stable_mosaic.version = 11 : i64} {
  func.func @_animate_flow_fused_kernel(%arg0: memref<2x48xf32, #tpu.memory_space<vmem>>, %arg1: memref<2x4x32xf32, #tpu.memory_space<vmem>>, %arg2: memref<16x32xf32, #tpu.memory_space<vmem>>, %arg3: memref<2x4x64xf32, #tpu.memory_space<vmem>>, %arg4: memref<2x4x1xf32, #tpu.memory_space<vmem>>, %arg5: memref<48x32xf32, #tpu.memory_space<vmem>>, %arg6: memref<1x32xf32, #tpu.memory_space<vmem>>, %arg7: memref<32x32xf32, #tpu.memory_space<vmem>>, %arg8: memref<1x32xf32, #tpu.memory_space<vmem>>, %arg9: memref<32x4xf32, #tpu.memory_space<vmem>>, %arg10: memref<32x36xf32, #tpu.memory_space<vmem>>, %arg11: memref<2x4x64xf32, #tpu.memory_space<vmem>>) attributes {dimension_semantics = [], scalar_prefetch = 0 : i64, scratch_operands = 0 : i64, tpu.core_type = #tpu.core_type<tc>} {
    %c0 = arith.constant 0 : index
    %c0_0 = arith.constant 0 : index
    %0 = vector.load %arg0[%c0, %c0_0] : memref<2x48xf32, #tpu.memory_space<vmem>>, vector<2x48xf32>
    %c0_1 = arith.constant 0 : index
    %c0_2 = arith.constant 0 : index
    %1 = vector.load %arg5[%c0_1, %c0_2] : memref<48x32xf32, #tpu.memory_space<vmem>>, vector<48x32xf32>
    %cst = arith.constant dense<0.000000e+00> : vector<2x32xf32>
    %2 = tpu.matmul %0, %1, %cst {dimension_numbers = #tpu.dot_dimension_numbers<[1], [0], [0], [1], [0, 0, 1, 1], [], []>} : vector<2x48xf32>, vector<48x32xf32>, vector<2x32xf32> -> vector<2x32xf32>
    %c0_3 = arith.constant 0 : index
    %c0_4 = arith.constant 0 : index
    %3 = vector.load %arg6[%c0_3, %c0_4] : memref<1x32xf32, #tpu.memory_space<vmem>>, vector<1x32xf32>
    %4 = vector.broadcast %3 : vector<1x32xf32> to vector<2x32xf32>
    %5 = arith.addf %2, %4 : vector<2x32xf32>
    %cst_5 = arith.constant dense<0.000000e+00> : vector<2xf32>
    %6 = vector.multi_reduction <add>, %5, %cst_5 [1] : vector<2x32xf32> to vector<2xf32>
    %7 = vector.shape_cast %6 : vector<2xf32> to vector<2x1xf32>
    %cst_6 = arith.constant 3.200000e+01 : f32
    %8 = vector.broadcast %cst_6 : f32 to vector<2x1xf32>
    %9 = arith.divf %7, %8 : vector<2x1xf32>
    %10 = vector.broadcast %9 : vector<2x1xf32> to vector<2x32xf32>
    %11 = arith.subf %5, %10 : vector<2x32xf32>
    %12 = arith.mulf %11, %11 : vector<2x32xf32>
    %cst_7 = arith.constant dense<0.000000e+00> : vector<2xf32>
    %13 = vector.multi_reduction <add>, %12, %cst_7 [1] : vector<2x32xf32> to vector<2xf32>
    %14 = vector.shape_cast %13 : vector<2xf32> to vector<2x1xf32>
    %cst_8 = arith.constant 3.200000e+01 : f32
    %15 = vector.broadcast %cst_8 : f32 to vector<2x1xf32>
    %16 = arith.divf %14, %15 : vector<2x1xf32>
    %17 = vector.broadcast %9 : vector<2x1xf32> to vector<2x32xf32>
    %18 = arith.subf %5, %17 : vector<2x32xf32>
    %cst_9 = arith.constant 9.99999974E-6 : f32
    %19 = vector.broadcast %cst_9 : f32 to vector<2x1xf32>
    %20 = arith.addf %16, %19 : vector<2x1xf32>
    %21 = math.rsqrt %20 : vector<2x1xf32>
    %22 = vector.broadcast %21 : vector<2x1xf32> to vector<2x32xf32>
    %23 = arith.mulf %18, %22 : vector<2x32xf32>
    %c0_10 = arith.constant 0 : index
    %c0_11 = arith.constant 0 : index
    %24 = vector.load %arg7[%c0_10, %c0_11] : memref<32x32xf32, #tpu.memory_space<vmem>>, vector<32x32xf32>
    %cst_12 = arith.constant dense<0.000000e+00> : vector<2x32xf32>
    %25 = tpu.matmul %23, %24, %cst_12 {dimension_numbers = #tpu.dot_dimension_numbers<[1], [0], [0], [1], [0, 0, 1, 1], [], []>} : vector<2x32xf32>, vector<32x32xf32>, vector<2x32xf32> -> vector<2x32xf32>
    %c0_13 = arith.constant 0 : index
    %c0_14 = arith.constant 0 : index
    %26 = vector.load %arg8[%c0_13, %c0_14] : memref<1x32xf32, #tpu.memory_space<vmem>>, vector<1x32xf32>
    %27 = vector.broadcast %26 : vector<1x32xf32> to vector<2x32xf32>
    %28 = arith.addf %25, %27 : vector<2x32xf32>
    %c0_15 = arith.constant 0 : index
    %c0_16 = arith.constant 0 : index
    %c0_17 = arith.constant 0 : index
    %29 = vector.load %arg1[%c0_15, %c0_16, %c0_17] : memref<2x4x32xf32, #tpu.memory_space<vmem>>, vector<2x4x32xf32>
    %c0_18 = arith.constant 0 : index
    %c0_19 = arith.constant 0 : index
    %30 = vector.load %arg2[%c0_18, %c0_19] : memref<16x32xf32, #tpu.memory_space<vmem>>, vector<16x32xf32>
    %31 = vector.extract_strided_slice %29 {offsets = [0, 0, 0], sizes = [1, 4, 32], strides = [1, 1, 1]} : vector<2x4x32xf32> to vector<1x4x32xf32>
    %32 = vector.shape_cast %31 : vector<1x4x32xf32> to vector<4x32xf32>
    %33 = vector.extract_strided_slice %28 {offsets = [0, 0], sizes = [1, 32], strides = [1, 1]} : vector<2x32xf32> to vector<1x32xf32>
    %34 = vector.extract_strided_slice %30 {offsets = [0, 0], sizes = [8, 32], strides = [1, 1]} : vector<16x32xf32> to vector<8x32xf32>
    %35 = vector.extract_strided_slice %29 {offsets = [1, 0, 0], sizes = [1, 4, 32], strides = [1, 1, 1]} : vector<2x4x32xf32> to vector<1x4x32xf32>
    %36 = vector.shape_cast %35 : vector<1x4x32xf32> to vector<4x32xf32>
    %37 = vector.extract_strided_slice %28 {offsets = [1, 0], sizes = [1, 32], strides = [1, 1]} : vector<2x32xf32> to vector<1x32xf32>
    %38 = vector.extract_strided_slice %30 {offsets = [8, 0], sizes = [8, 32], strides = [1, 1]} : vector<16x32xf32> to vector<8x32xf32>
    %39 = tpu.concatenate %32, %33, %34, %36, %37, %38 in 0 : vector<4x32xf32>, vector<1x32xf32>, vector<8x32xf32>, vector<4x32xf32>, vector<1x32xf32>, vector<8x32xf32> -> vector<26x32xf32>
    %c0_20 = arith.constant 0 : index
    %c0_21 = arith.constant 0 : index
    %40 = vector.load %arg10[%c0_20, %c0_21] : memref<32x36xf32, #tpu.memory_space<vmem>>, vector<32x36xf32>
    %cst_22 = arith.constant dense<0.000000e+00> : vector<26x36xf32>
    %41 = tpu.matmul %39, %40, %cst_22 {dimension_numbers = #tpu.dot_dimension_numbers<[1], [0], [0], [1], [0, 0, 1, 1], [], []>} : vector<26x32xf32>, vector<32x36xf32>, vector<26x36xf32> -> vector<26x36xf32>
    %c0_23 = arith.constant 0 : index
    %c0_24 = arith.constant 0 : index
    %42 = vector.load %arg9[%c0_23, %c0_24] : memref<32x4xf32, #tpu.memory_space<vmem>>, vector<32x4xf32>
    %c0_25 = arith.constant 0 : index
    %c0_26 = arith.constant 0 : index
    %c0_27 = arith.constant 0 : index
    %43 = vector.load %arg3[%c0_25, %c0_26, %c0_27] : memref<2x4x64xf32, #tpu.memory_space<vmem>>, vector<1x4x64xf32>
    %44 = vector.shape_cast %43 : vector<1x4x64xf32> to vector<4x64xf32>
    %c0_28 = arith.constant 0 : index
    %c0_29 = arith.constant 0 : index
    %c0_30 = arith.constant 0 : index
    %45 = vector.load %arg4[%c0_28, %c0_29, %c0_30] : memref<2x4x1xf32, #tpu.memory_space<vmem>>, vector<1x4x1xf32>
    %46 = vector.shape_cast %45 : vector<1x4x1xf32> to vector<4x1xf32>
    %47 = vector.broadcast %46 : vector<4x1xf32> to vector<4x64xf32>
    %48 = arith.addf %44, %47 : vector<4x64xf32>
    %cst_31 = arith.constant dense<0.000000e+00> : vector<32x64xf32>
    %49 = tpu.matmul %42, %48, %cst_31 {dimension_numbers = #tpu.dot_dimension_numbers<[1], [0], [0], [1], [0, 0, 1, 1], [], []>} : vector<32x4xf32>, vector<4x64xf32>, vector<32x64xf32> -> vector<32x64xf32>
    %50 = vector.extract_strided_slice %41 {offsets = [0, 0], sizes = [13, 36], strides = [1, 1]} : vector<26x36xf32> to vector<13x36xf32>
    %51 = vector.extract_strided_slice %50 {offsets = [0, 0], sizes = [13, 32], strides = [1, 1]} : vector<13x36xf32> to vector<13x32xf32>
    %52 = vector.extract_strided_slice %50 {offsets = [0, 32], sizes = [13, 4], strides = [1, 1]} : vector<13x36xf32> to vector<13x4xf32>
    %cst_32 = arith.constant dense<0.000000e+00> : vector<13x64xf32>
    %53 = tpu.matmul %51, %49, %cst_32 {dimension_numbers = #tpu.dot_dimension_numbers<[1], [0], [0], [1], [0, 0, 1, 1], [], []>} : vector<13x32xf32>, vector<32x64xf32>, vector<13x64xf32> -> vector<13x64xf32>
    %cst_33 = arith.constant dense<0xFF800000> : vector<64xf32>
    %54 = vector.multi_reduction <maximumf>, %53, %cst_33 [0] : vector<13x64xf32> to vector<64xf32>
    %55 = vector.shape_cast %54 : vector<64xf32> to vector<1x64xf32>
    %56 = vector.broadcast %55 : vector<1x64xf32> to vector<13x64xf32>
    %57 = arith.subf %53, %56 : vector<13x64xf32>
    %58 = math.exp %57 : vector<13x64xf32>
    %cst_34 = arith.constant dense<0.000000e+00> : vector<64xf32>
    %59 = vector.multi_reduction <add>, %58, %cst_34 [0] : vector<13x64xf32> to vector<64xf32>
    %60 = vector.shape_cast %59 : vector<64xf32> to vector<1x64xf32>
    %61 = tpu.reciprocal %60 {approx = true} : vector<1x64xf32> -> vector<1x64xf32>
    %cst_35 = arith.constant dense<0.000000e+00> : vector<4x64xf32>
    %62 = tpu.matmul %52, %58, %cst_35 {dimension_numbers = #tpu.dot_dimension_numbers<[0], [0], [1], [1], [0, 1, 1, 1], [], []>} : vector<13x4xf32>, vector<13x64xf32>, vector<4x64xf32> -> vector<4x64xf32>
    %63 = vector.broadcast %61 : vector<1x64xf32> to vector<4x64xf32>
    %64 = arith.mulf %62, %63 : vector<4x64xf32>
    %65 = arith.addf %44, %64 : vector<4x64xf32>
    %c0_36 = arith.constant 0 : index
    %c0_37 = arith.constant 0 : index
    %c0_38 = arith.constant 0 : index
    %66 = vector.load %arg11[%c0_36, %c0_37, %c0_38] : memref<2x4x64xf32, #tpu.memory_space<vmem>>, vector<1x4x64xf32>
    %67 = vector.shape_cast %66 : vector<1x4x64xf32> to vector<4x64xf32>
    %68 = vector.shape_cast %65 : vector<4x64xf32> to vector<1x4x64xf32>
    tpu.vector_store %arg11[%c0_36, %c0_37, %c0_38], %68 {strides = array<i32>} : memref<2x4x64xf32, #tpu.memory_space<vmem>>, vector<1x4x64xf32>,
    %c1 = arith.constant 1 : index
    %c0_39 = arith.constant 0 : index
    %c0_40 = arith.constant 0 : index
    %69 = vector.load %arg3[%c1, %c0_39, %c0_40] : memref<2x4x64xf32, #tpu.memory_space<vmem>>, vector<1x4x64xf32>
    %70 = vector.shape_cast %69 : vector<1x4x64xf32> to vector<4x64xf32>
    %c1_41 = arith.constant 1 : index
    %c0_42 = arith.constant 0 : index
    %c0_43 = arith.constant 0 : index
    %71 = vector.load %arg4[%c1_41, %c0_42, %c0_43] : memref<2x4x1xf32, #tpu.memory_space<vmem>>, vector<1x4x1xf32>
    %72 = vector.shape_cast %71 : vector<1x4x1xf32> to vector<4x1xf32>
    %73 = vector.broadcast %72 : vector<4x1xf32> to vector<4x64xf32>
    %74 = arith.addf %70, %73 : vector<4x64xf32>
    %cst_44 = arith.constant dense<0.000000e+00> : vector<32x64xf32>
    %75 = tpu.matmul %42, %74, %cst_44 {dimension_numbers = #tpu.dot_dimension_numbers<[1], [0], [0], [1], [0, 0, 1, 1], [], []>} : vector<32x4xf32>, vector<4x64xf32>, vector<32x64xf32> -> vector<32x64xf32>
    %76 = vector.extract_strided_slice %41 {offsets = [13, 0], sizes = [13, 36], strides = [1, 1]} : vector<26x36xf32> to vector<13x36xf32>
    %77 = vector.extract_strided_slice %76 {offsets = [0, 0], sizes = [13, 32], strides = [1, 1]} : vector<13x36xf32> to vector<13x32xf32>
    %78 = vector.extract_strided_slice %76 {offsets = [0, 32], sizes = [13, 4], strides = [1, 1]} : vector<13x36xf32> to vector<13x4xf32>
    %cst_45 = arith.constant dense<0.000000e+00> : vector<13x64xf32>
    %79 = tpu.matmul %77, %75, %cst_45 {dimension_numbers = #tpu.dot_dimension_numbers<[1], [0], [0], [1], [0, 0, 1, 1], [], []>} : vector<13x32xf32>, vector<32x64xf32>, vector<13x64xf32> -> vector<13x64xf32>
    %cst_46 = arith.constant dense<0xFF800000> : vector<64xf32>
    %80 = vector.multi_reduction <maximumf>, %79, %cst_46 [0] : vector<13x64xf32> to vector<64xf32>
    %81 = vector.shape_cast %80 : vector<64xf32> to vector<1x64xf32>
    %82 = vector.broadcast %81 : vector<1x64xf32> to vector<13x64xf32>
    %83 = arith.subf %79, %82 : vector<13x64xf32>
    %84 = math.exp %83 : vector<13x64xf32>
    %cst_47 = arith.constant dense<0.000000e+00> : vector<64xf32>
    %85 = vector.multi_reduction <add>, %84, %cst_47 [0] : vector<13x64xf32> to vector<64xf32>
    %86 = vector.shape_cast %85 : vector<64xf32> to vector<1x64xf32>
    %87 = tpu.reciprocal %86 {approx = true} : vector<1x64xf32> -> vector<1x64xf32>
    %cst_48 = arith.constant dense<0.000000e+00> : vector<4x64xf32>
    %88 = tpu.matmul %78, %84, %cst_48 {dimension_numbers = #tpu.dot_dimension_numbers<[0], [0], [1], [1], [0, 1, 1, 1], [], []>} : vector<13x4xf32>, vector<13x64xf32>, vector<4x64xf32> -> vector<4x64xf32>
    %89 = vector.broadcast %87 : vector<1x64xf32> to vector<4x64xf32>
    %90 = arith.mulf %88, %89 : vector<4x64xf32>
    %91 = arith.addf %70, %90 : vector<4x64xf32>
    %c1_49 = arith.constant 1 : index
    %c0_50 = arith.constant 0 : index
    %c0_51 = arith.constant 0 : index
    %92 = vector.load %arg11[%c1_49, %c0_50, %c0_51] : memref<2x4x64xf32, #tpu.memory_space<vmem>>, vector<1x4x64xf32>
    %93 = vector.shape_cast %92 : vector<1x4x64xf32> to vector<4x64xf32>
    %94 = vector.shape_cast %91 : vector<4x64xf32> to vector<1x4x64xf32>
    tpu.vector_store %arg11[%c1_49, %c0_50, %c0_51], %94 {strides = array<i32>} : memref<2x4x64xf32, #tpu.memory_space<vmem>>, vector<1x4x64xf32>,
    return
  }
}

</mosaic_0001>

<bundles_post_ra>
// kernel: animate_flow_forward.1
= control target key start
LH: loop header
LB: loop body
LE: loop exit
PB: predicated region body
PF: predicated region fallthrough
CT: control target
= control target key end

     0   :  { %v1261_v0 = vmov 0.0|0.0   ;;  %vm1262_vm0 = vmmov 0   ;;  %v1263_v4 = vmov 0.0   ;;  %vm52_vm1 = vcmask 392192   ;;  %s1506_s5 = inlined_call_operand.vmem [shape: f32[48,32], index: 5, kind: input, shape index: {}]   ;;  %s1507_s0 = inlined_call_operand.vmem [shape: f32[2,48], index: 0, kind: input, shape index: {}]   ;;  %s1508_s6 = inlined_call_operand.vmem [shape: f32[1,32], index: 6, kind: input, shape index: {}]   ;;  %s1509_s4 = inlined_call_operand.vmem [shape: f32[2,4,1], index: 4, kind: input, shape index: {}]   ;;  %s1510_s3 = inlined_call_operand.vmem [shape: f32[2,4,64], index: 3, kind: input, shape index: {}]   ;;  %s1511_s9 = inlined_call_operand.vmem [shape: f32[32,4], index: 9, kind: input, shape index: {}]   ;;  %s1512_s7 = inlined_call_operand.vmem [shape: f32[32,32], index: 7, kind: input, shape index: {}]   ;;  %s1513_s10 = inlined_call_operand.vmem [shape: f32[32,36], index: 10, kind: input, shape index: {}]   ;;  %s1514_s1 = inlined_call_operand.vmem [shape: f32[2,4,32], index: 1, kind: input, shape index: {}]   ;;  %s1515_s8 = inlined_call_operand.vmem [shape: f32[1,32], index: 8, kind: input, shape index: {}]   ;;  %s1516_s2 = inlined_call_operand.vmem [shape: f32[16,32], index: 2, kind: input, shape index: {}]   ;;  %s1517_s11 = inlined_call_operand.vmem [shape: f32[2,4,64], index: 11, kind: output, shape index: {}]  }
   0x1   :  { %1192 = vmatprep.subr.bf16.mxu0 %v1261_v0  ;;  %v39_v1 = vld [vmem:[%s1506_s5] sm:$0xff]  ;;  %v40_v2 = vld [vmem:[%s1506_s5 + $0x8] sm:$0xff]  ;;  %v41_v3 = vld [vmem:[%s1506_s5 + $0x10] sm:$0xff]  ;;  %1112 = vmatprep.mubr.msk.f32.mxu0 %vm1262_vm0, %v1263_v4  ;;  %vm126_vm2 = vcmask 254976   ;;  %v1264_v17 = vmov 0   ;;  %vm242_vm3 = vcmask 1043456  }
   0x2   :  { %v1193_v5 = vpack.c.bf16 %v40_v2, %v39_v1  ;;  %v42_v6 = vld [vmem:[%s1506_s5 + $0x18] sm:$0xff]  ;;  %1201 = vmatprep.subr.bf16.mxu1 %v1261_v0  ;;  %1123 = vmatprep.mubr.msk.f32.mxu1 %vm1262_vm0, %v1263_v4  ;;  %v43_v8 = vld [vmem:[%s1506_s5 + $0x20] sm:$0xff]  ;;  %v44_v9 = vld [vmem:[%s1506_s5 + $0x28] sm:$0xff]  ;;  %vm363_vm4 = vcmask 31744   ;;  %vm152_vm5 = vcmask 261120   ;;  %vm247_vm6 = vcmask 1040384  }
   0x3   :  { %v1196_v7 = vpack.c.bf16 %v42_v6, %v41_v3  ;;  %v1199_v10 = vpack.c.bf16 %v44_v9, %v43_v8  ;;  %v38_v11 = vld [vmem:[%s1507_s0] sm:$0x3]  ;;  %1245 = vset.pattern.permute.xlu1 %v1264_v17  ;;  %v1381_v28 = vld [vmem:[%s1511_s9 + $0x8] sm:$0xff]  ;;  %v1388_v29 = vld [vmem:[%s1511_s9 + $0x10] sm:$0xff]  ;;  %vm244_vm7 = vcmask 1044480   ;;  %vm249_vm8 = vcmask 1041408  }
   0x4   :  { %1194 = vmatpush3.bf16.msra.mxu0 %v1193_v5  ;;  %v1023_v12 = vld [vmem:[%s1508_s6] ss:$0 sm:$0xff]  ;;  %v1393_v30 = vld [vmem:[%s1511_s9 + $0x18] sm:$0xff]  ;;  %v142_v32 = vld [vmem:[%s1512_s7 + $0x8] sm:$0xff]  ;;  %vm791_vm9 = vcmask 1042432   ;;  %vm547_vm10 = vcmask 520192  }
   0x5   :  { %1195 = vmatprep.subr.bf16.mxu0 %v1261_v0  ;;  %v356_v18 = vld [vmem:[%s1509_s4] sm:$0xf]  ;;  %v143_v33 = vld [vmem:[%s1512_s7 + $0x10] sm:$0xff]  ;;  %v144_v35 = vld [vmem:[%s1512_s7 + $0x18] sm:$0xff]  ;;  %vm545_vm11 = vcmask 523264   ;;  %vm1266_vm12 = vmmov 1  }
   0x6   :  { %359 = vperm.xlu1 %1245, %v356_v18   ;;  %v1366_v25 = vld [vmem:[%s1510_s3] sm:$0xf]  ;;  %v1205_v36 = vpack.c.bf16 %v144_v35, %v143_v33  ;;  %v1041_v37 = vld [vmem:[%s1509_s4 + $0x4] sm:$0xf]  ;;  %v252_v53 = vld [vmem:[%s1513_s10 + $0x8] sm:$0xff]  ;;  %vm610_vm14 = vcmask 105472  }
   0x7   :  { %v1373_v27 = vld [vmem:[%s1511_s9] sm:$0xff]  ;;  %v253_v55 = vld [vmem:[%s1513_s10 + $0x10] sm:$0xff]  ;;  %v254_v56 = vld [vmem:[%s1513_s10 + $0x18] sm:$0xff]  ;;  %vm689_vm15 = vcmask 519168  }
   0x8   :  { %1197 = vmatpush3.bf16.msra.mxu0 %v1196_v7  ;;  %v141_v31 = vld [vmem:[%s1512_s7] sm:$0xff]  ;;  %v1211_v57 = vpack.c.bf16 %v254_v56, %v253_v55  ;;  %v229_v3 = vld [vmem:[%s1516_s2 + $0x8] sm:$0xff]  ;;  %vm1479_vm13 = vmpackc.low %vm244_vm7, %vm1266_vm12 }
   0x9   :  { %1198 = vmatprep.subr.bf16.mxu0 %v1261_v0  ;;  %v1202_v34 = vpack.c.bf16 %v142_v32, %v141_v31  ;;  %v1419_v47 = vld [vmem:[%s1510_s3 + $0x4] sm:$0xf]  ;;  %v1025_v58 = vld [vmem:[%s1515_s8] ss:$0 sm:$0xff]  ;;  %v240_v7 = vrot.slane %v229_v3, 6 }
   0xa   :  { %697 = vperm.xlu1 %1245, %v1041_v37   ;;  %v251_v52 = vld [vmem:[%s1513_s10] sm:$0xff] }
   0xb   :  { %1203 = vmatpush3.bf16.msra.mxu1 %v1202_v34  ;;  %v1207_v54 = vpack.c.bf16 %v252_v53, %v251_v52  ;;  %v227_v59 = vld [vmem:[%s1514_s1 + $0x4] sm:$0xf]  ;;  %v226_v5 = vld [vmem:[%s1514_s1] sm:$0xf]  ;;  %s1265_s1 = smov 96  }
   0xc   :  { %1200 = vmatpush3.bf16.msra.mxu0 %v1199_v10  ;;  %1204 = vmatprep.subr.bf16.mxu1 %v1261_v0  ;;  %v228_v60 = vld [vmem:[%s1516_s2] sm:$0xff]  ;;  %v237_v63 = vrot.slane %v227_v59, 3 }
   0xd   :  { %v234_v2 = vrot.slane %v228_v60, 3 }
   0xf   :  { %1113 = vmatmul.mubr.msk.f32.vlgmr.msra.gmra.mrb[0].mxu0 %vm52_vm1, %v38_v11  ;;  %1206 = vmatpush3.bf16.msra.mxu1 %v1205_v36  ;;  %v246_v10 = vsel %vm244_vm7, %v234_v2, %v237_v63 }
  0x10   :  { %1142 = vmatprep.mubr.msk.f32.mxu0 %vm363_vm4, %v1373_v27  ;;  %1208 = vmatprep.subr.bf16.mxu1 %v1207_v54 }
  0x85   :  { %v360_v24 = vpop.permute.xlu1 %359 }
  0x86   :  { %v362_v26 = vadd.f32 %v360_v24, %v1366_v25 }
  0x88   :  { %1140 = vmatprep.subr.msk.mxu0 %vm242_vm3, %v362_v26 }
  0x89   :  { %1141 = vmatpush3.msk.msra.mxu0 %vm242_vm3, %v362_v26  ;;  %v698_v46 = vpop.permute.xlu1 %697 }
  0x8a   :  { %1143 = vmatmul.mubr.msk.f32.vlgmr.msra.gmra.mrb[2].mxu0 %vm363_vm4, %v1381_v28  ;;  %v700_v51 = vadd.f32 %v1419_v47, %v698_v46 }
  0x8b   :  { %1145 = vmatprep.mubr.msk.f32.mxu0 %vm363_vm4, %v1388_v29 }
  0x8e   :  { %1146 = vmatmul.mubr.msk.f32.gmra.mrb[4].mxu0 %vm363_vm4, %v1393_v30 }
  0xe2   :  { %v122_v13 = vpop.f32.mrb[0].mxu0 }
  0xe3   :  { %v123_v14 = vadd.f32 %v1023_v12, %v122_v13  ;;  %v1114_v15 = vpop.f32.mrb[1].mxu0 }
  0xe5   :  { %v127_v16 = vsel %vm126_vm2, %v123_v14, 0.0 }
  0xe6   :  { %128 = vadd.xlane.f32.xlu0 %v127_v16 }
 0x15d   :  { %v1144_v43 = vpop.f32.mrb[2].mxu0 }
 0x15e   :  { %v445_v44 = vpop.f32.mrb[3].mxu0 }
 0x15f   :  { %v1215_v45 = vpack.c.bf16 %v1144_v43, %v445_v44 }
 0x161   :  { %v1147_v48 = vpop.f32.mrb[4].mxu0  ;;  %1216 = vmatprep.subr.bf16.mxu0 %v1215_v45 }
 0x162   :  { %v455_v49 = vpop.f32.mrb[5].mxu0  ;;  %1218 = vmatpush3.bf16.msra.mxu0 %v1215_v45 }
 0x163   :  { %v1219_v50 = vpack.c.bf16 %v1147_v48, %v455_v49 }
 0x165   :  { %1220 = vmatprep.subr.bf16.mxu0 %v1219_v50 }
 0x166   :  { %1222 = vmatpush3.bf16.msra.mxu0 %v1219_v50 }
 0x167   :  { %1166 = vmatprep.subr.msk.mxu0 %vm242_vm3, %v700_v51 }
 0x173   :  { %v129_v19 = vpop.xlane.xlu0 %128 }
 0x174   :  { %v131_v20 = vmul.f32 0.03125, %v129_v19 }
 0x176   :  { %v132_v21 = vsub.f32 %v123_v14, %v131_v20 }
 0x178   :  { %v133_v22 = vmul.f32 %v132_v21, %v132_v21 }
 0x17a   :  { %v134_v23 = vsel %vm126_vm2, %v133_v22, 0.0 }
 0x17b   :  { %135 = vadd.xlane.f32.xlu0 %v134_v23 }
 0x208   :  { %v136_v38 = vpop.xlane.xlu0 %135 }
 0x209   :  { %v137_v39 = vmul.f32 0.03125, %v136_v38 }
 0x20b   :  { %v138_v40 = vadd.f32 1e-05, %v137_v39 }
 0x20d   :  { %1247 = vrsqrt.f32 %v138_v40 }
 0x217   :  { %v1248_v41 = vpop.eup %1247 }
 0x218   :  { %v140_v42 = vmul.f32 %v1248_v41, %v132_v21 }
 0x21a   :  { %1124 = vmatmul.mubr.msk.f32.vlgmr.msra.gmra.mrb[0].mxu1 %vm152_vm5, %v140_v42 }
 0x21b   :  { %1210 = vmatpush3.bf16.msra.mxu1 %v1207_v54 }
 0x21c   :  { %1212 = vmatprep.subr.bf16.mxu1 %v1211_v57 }
 0x21f   :  { %1214 = vmatpush3.bf16.msra.mxu1 %v1211_v57 }
 0x220   :  { %1223 = vmatprep.subr.bf16.mxu1 %v1261_v0 }
 0x2ed   :  { %v222_v61 = vpop.f32.mrb[0].mxu1 }
 0x2ee   :  { %v223_v62 = vadd.f32 %v1025_v58, %v222_v61  ;;  %v1125_v1 = vpop.f32.mrb[1].mxu1 }
 0x2f0   :  { %v231_v6 = vrot.slane %v223_v62, 4  ;;  %v248_v8 = vsel %vm247_vm6, %v237_v63, %v223_v62 }
 0x2f1   :  { %v250_v12 = vsel %vm249_vm8, %v248_v8, %v240_v7 }
 0x2f2   :  { %v243_v9 = vsel %vm242_vm3, %v226_v5, %v231_v6 }
 0x2f3   :  { %v245_v11 = vsel %vm244_vm7, %v243_v9, %v234_v2 }
 0x2f4   :  { %1134 = vmatprep.mubr.msk.f32.mxu1 %vm152_vm5, %v245_v11 }
 0x2f5   :  { %1135 = vmatmul.mubr.msk.f32.vlgmr.msra.gmra.mrb[2].mxu1 %vm152_vm5, %v246_v10 }
 0x2f6   :  { %1137 = vmatprep.mubr.msk.f32.mxu1 %vm152_vm5, %v250_v12 }
 0x2f9   :  { %1138 = vmatmul.mubr.msk.f32.gmra.mrb[4].mxu1 %vm152_vm5, %v240_v7 }
 0x2fa   :  { %1163 = vmatprep.mubr.msk.f32.mxu1 %vm1262_vm0, %v1263_v4 }
 0x3c8   :  { %v1136_v13 = vpop.f32.mrb[2].mxu1 }
 0x3c9   :  { %574 = vrot.lane.b32.xlu1 %v1136_v13, %s1265_s1  ;;  %v332_v14 = vpop.f32.mrb[3].mxu1  ;;  %v792_v19 = vrot.slane %v1136_v13, 5 }
 0x3ca   :  { %572 = vrot.lane.b32.xlu0 %v332_v14, %s1265_s1  ;;  %1156 = vmatprep.mubr.msk.f32.mxu0 %vm152_vm5, %v332_v14 }
 0x3cb   :  { %1157 = vmatmul.mubr.msk.f32.vlgmr.msra.gmra.mrb[6].mxu0 %vm152_vm5, %v1136_v13 }
 0x3cc   :  { %1167 = vmatpush3.msk.msra.mxu0 %vm242_vm3, %v700_v51  ;;  %v1139_v15 = vpop.f32.mrb[4].mxu1  ;;  %1168 = vmatprep.mubr.msk.f32.mxu0 %vm363_vm4, %v1373_v27 }
 0x3cd   :  { %v795_v16 = vrot.slane %v1139_v15, 5  ;;  %v342_v18 = vpop.f32.mrb[5].mxu1  ;;  %1235 = vmatprep.subr.bf16.mxu0 %v1261_v0 }
 0x3ce   :  { %v793_v20 = vrot.slane %v342_v18, 5 }
 0x3cf   :  { %1169 = vmatmul.mubr.msk.f32.vlgmr.msra.gmra.mrb[8].mxu0 %vm363_vm4, %v1381_v28 }
 0x3d0   :  { %v794_v21 = vsel %vm791_vm9, %v792_v19, %v793_v20  ;;  %1171 = vmatprep.mubr.msk.f32.mxu0 %vm363_vm4, %v1388_v29  ;;  %v796_v22 = vsel %vm791_vm9, %v793_v20, %v795_v16 }
 0x3d1   :  { %901 = vrot.lane.b32.xlu0 %v794_v21, %s1265_s1 }
 0x3d3   :  { %1172 = vmatmul.mubr.msk.f32.gmra.mrb[10].mxu0 %vm363_vm4, %v1393_v30 }
 0x3d4   :  { %1189 = vmatprep.mubr.msk.f32.mxu0 %vm1262_vm0, %v1263_v4 }
 0x3d5   :  { %903 = vrot.lane.b32.xlu0 %v796_v22, %s1265_s1 }
 0x43b   :  { %v575_v0 = vpop.permute.xlu1 %574 }
 0x43c   :  { %v573_v23 = vpop.permute.xlu0 %572 }
 0x43d   :  { %578 = vxpose.xlu1.b32.start [1/2] (short) (narrow) %v573_v23, 8 }
 0x441   :  { %579 = vxpose.xlu1.b32.end [2/2] (short) (narrow) %v575_v0, 8 }
 0x443   :  { %v902_v24 = vpop.permute.xlu0 %901 }
 0x444   :  { %907 = vxpose.xlu0.b32.start [1/2] (short) (narrow) %v902_v24, 8 }
 0x447   :  { %v904_v26 = vpop.permute.xlu0 %903 }
 0x448   :  { %908 = vxpose.xlu0.b32.end [2/2] (short) (narrow) %v904_v26, 8 }
 0x471   :  { %1246 = vset.pattern.permute.xlu0 %v1264_v17 }
 0x49e   :  { %v1158_v27 = vpop.f32.mrb[6].mxu0 }
 0x49f   :  { %v548_v28 = vsel %vm547_vm10, %v1158_v27, -inf  ;;  %v536_v29 = vpop.f32.mrb[7].mxu0 }
 0x4a0   :  { %v546_v30 = vsel %vm545_vm11, %v536_v29, -inf }
 0x4a1   :  { %v549_v4 = vmax.f32 %v546_v30, %v548_v28 }
 0x4a2   :  { %v1170_v31 = vpop.f32.mrb[8].mxu0 }
 0x4a3   :  { %v550_v32 = vrot.slane %v549_v4, 4  ;;  %v770_v33 = vpop.f32.mrb[9].mxu0 }
 0x4a4   :  { %v1227_v34 = vpack.c.bf16 %v1170_v31, %v770_v33 }
 0x4a5   :  { %v551_v35 = vmax.f32 %v549_v4, %v550_v32 }
 0x4a6   :  { %v1173_v36 = vpop.f32.mrb[10].mxu0 }
 0x4a7   :  { %v552_v37 = vrot.slane %v551_v35, 2  ;;  %v780_v38 = vpop.f32.mrb[11].mxu0 }
 0x4a8   :  { %v1231_v39 = vpack.c.bf16 %v1173_v36, %v780_v38 }
 0x4a9   :  { %v553_v40 = vmax.f32 %v551_v35, %v552_v37 }
 0x4ab   :  { %v554_v17 = vrot.slane %v553_v40, 1 }
 0x4ad   :  { %v555_v41 = vmax.f32 %v553_v40, %v554_v17 }
 0x4af   :  { %v556_v42 = vsub.f32 %v536_v29, %v555_v41  ;;  %v557_v43 = vsub.f32 %v1158_v27, %v555_v41 }
 0x4b1   :  { %v558_v44 = vmul.f32 1.442695, %v556_v42  ;;  %v560_v45 = vmul.f32 1.442695, %v557_v43 }
 0x4b3   :  { %1249 = vpow2.f32 %v558_v44 }
 0x4b4   :  { %1251 = vpow2.f32 %v560_v45 }
 0x4bd   :  { %v1250_v46 = vpop.eup %1249  ;;  %v594_v54 = vpop.trf.xlu1 }
 0x4be   :  { %v1252_v48 = vpop.eup %1251  ;;  %v562_v49 = vsel %vm545_vm11, %v1250_v46, 0.0 }
 0x4bf   :  { %v563_v51 = vsel %vm547_vm10, %v1252_v48, 0.0  ;;  %v1224_v52 = vpack.c.bf16 %v1252_v48, %v1250_v46 }
 0x4c0   :  { %v564_v53 = vadd.f32 %v563_v51, %v562_v49 }
 0x4c1   :  { %1226 = vmatpush3.bf16.msk.msra.mxu1 %vm1479_vm13, %v1224_v52 }
 0x4c2   :  { %1228 = vmatprep.subr.bf16.mxu1 %v1227_v34  ;;  %v565_v55 = vrot.slane %v564_v53, 4 }
 0x4c4   :  { %1164 = vmatmul.mubr.msk.f32.vlgmr.msra.gmra.mrb[6].mxu1 %vm610_vm14, %v594_v54  ;;  %v566_v56 = vadd.f32 %v565_v55, %v564_v53  ;;  %v923_v24 = vpop.trf.xlu0 }
 0x4c5   :  { %1230 = vmatpush3.bf16.msra.mxu1 %v1227_v34  ;;  %1182 = vmatprep.mubr.msk.f32.mxu1 %vm152_vm5, %v794_v21 }
 0x4c6   :  { %1232 = vmatprep.subr.bf16.mxu1 %v1231_v39  ;;  %v567_v57 = vrot.slane %v566_v56, 2 }
 0x4c8   :  { %v568_v58 = vadd.f32 %v567_v57, %v566_v56 }
 0x4c9   :  { %1234 = vmatpush3.bf16.msra.mxu1 %v1231_v39 }
 0x4ca   :  { %v569_v59 = vrot.slane %v568_v58, 1 }
 0x4cc   :  { %1183 = vmatmul.mubr.msk.f32.vlgmr.msra.gmra.mrb[8].mxu1 %vm152_vm5, %v796_v22  ;;  %v570_v60 = vadd.f32 %v569_v59, %v568_v58 }
 0x4ce   :  { %1253 = vrcp.f32 %v570_v60 }
 0x4d8   :  { %v1254_v61 = vpop.eup %1253 }
 0x597   :  { %v683_v62 = vpop.f32.mrb[6].mxu1 }
 0x598   :  { %v687_v63 = vmul.f32 %v1254_v61, %v683_v62  ;;  %v1165_v1 = vpop.f32.mrb[7].mxu1 }
 0x59a   :  { %v688_v2 = vadd.f32 %v687_v63, %v1366_v25 }
 0x59c   :  { %690 = vst.msk [vmem:[%s1517_s11] sm:$0xf] %vm689_vm15, %v688_v2 }
 0x59f   :  { %v1184_v3 = vpop.f32.mrb[8].mxu1 }
 0x5a0   :  { %v877_v5 = vsel %vm547_vm10, %v1184_v3, -inf  ;;  %v867_v6 = vpop.f32.mrb[9].mxu1 }
 0x5a1   :  { %v876_v7 = vsel %vm545_vm11, %v867_v6, -inf }
 0x5a2   :  { %v878_v8 = vmax.f32 %v876_v7, %v877_v5 }
 0x5a4   :  { %v879_v9 = vrot.slane %v878_v8, 4 }
 0x5a6   :  { %v880_v10 = vmax.f32 %v878_v8, %v879_v9 }
 0x5a8   :  { %v881_v11 = vrot.slane %v880_v10, 2 }
 0x5aa   :  { %v882_v12 = vmax.f32 %v880_v10, %v881_v11 }
 0x5ac   :  { %v883_v13 = vrot.slane %v882_v12, 1 }
 0x5ae   :  { %v884_v14 = vmax.f32 %v882_v12, %v883_v13 }
 0x5b0   :  { %v885_v15 = vsub.f32 %v867_v6, %v884_v14  ;;  %v886_v25 = vsub.f32 %v1184_v3, %v884_v14 }
 0x5b2   :  { %v887_v16 = vmul.f32 1.442695, %v885_v15  ;;  %v889_v18 = vmul.f32 1.442695, %v886_v25 }
 0x5b4   :  { %1255 = vpow2.f32 %v887_v16 }
 0x5b5   :  { %1257 = vpow2.f32 %v889_v18 }
 0x5be   :  { %v1256_v19 = vpop.eup %1255 }
 0x5bf   :  { %v1258_v20 = vpop.eup %1257  ;;  %v891_v21 = vsel %vm545_vm11, %v1256_v19, 0.0 }
 0x5c0   :  { %v892_v22 = vsel %vm547_vm10, %v1258_v20, 0.0  ;;  %v1236_v23 = vpack.c.bf16 %v1258_v20, %v1256_v19 }
 0x5c1   :  { %v893_v0 = vadd.f32 %v892_v22, %v891_v21 }
 0x5c2   :  { %1238 = vmatpush3.bf16.msk.msra.mxu0 %vm1479_vm13, %v1236_v23 }
 0x5c3   :  { %v894_v26 = vrot.slane %v893_v0, 4 }
 0x5c5   :  { %1190 = vmatmul.mubr.msk.f32.vlgmr.msra.gmra.mrb[12].mxu0 %vm610_vm14, %v923_v24  ;;  %v895_v27 = vadd.f32 %v894_v26, %v893_v0 }
 0x5c7   :  { %v896_v28 = vrot.slane %v895_v27, 2 }
 0x5c9   :  { %v897_v29 = vadd.f32 %v896_v28, %v895_v27 }
 0x5cb   :  { %v898_v30 = vrot.slane %v897_v29, 1 }
 0x5cd   :  { %v899_v4 = vadd.f32 %v898_v30, %v897_v29 }
 0x5cf   :  { %1259 = vrcp.f32 %v899_v4 }
 0x5d9   :  { %v1260_v31 = vpop.eup %1259 }
 0x698   :  { %v1011_v32 = vpop.f32.mrb[12].mxu0 }
 0x699   :  { %v1015_v33 = vmul.f32 %v1260_v31, %v1011_v32  ;;  %v1191_v34 = vpop.f32.mrb[13].mxu0 }
 0x69b   :  { %v1016_v35 = vadd.f32 %v1419_v47, %v1015_v33 }
 0x69d   :  { %1051 = vst.msk [vmem:[%s1517_s11 + $0x4] sm:$0xf] %vm689_vm15, %v1016_v35 }

</bundles_post_ra>
